<compile_context>
chip_gen: v7x
topology: tpu7x:2x2x1
jax: 0.10.0
libtpu: 0.0.40
codegen_flags: <defaults>
</compile_context>

<pallas_src>
import functools
import math

import jax
import jax.numpy as jnp
from jax import lax
from jax.experimental import pallas as pl
from jax.experimental.pallas import tpu as pltpu


_MASK_BIAS = -1e9  # large-but-finite additive bias for masked keys (avoids -inf NaN path)


# ----------------------------- in-kernel helpers -----------------------------

def _layernorm(x, g, b, eps=1e-12):
    mean = jnp.mean(x, axis=-1, keepdims=True)
    var = jnp.mean(jnp.square(x - mean), axis=-1, keepdims=True)
    return (x - mean) * lax.rsqrt(var + eps) * g + b


def _gelu_tanh(x):
    # TODO(synk): HF Bert default activation is exact erf-GELU; erf has no guaranteed
    # Mosaic lowering, so the tanh approximation is used (EUP tanh, ~1e-3 deviation).
    c = math.sqrt(2.0 / math.pi)
    return 0.5 * x * (1.0 + jnp.tanh(c * (x + 0.044715 * x * x * x)))


# ----------------------------- Pallas kernels --------------------------------

def embed_layernorm_kernel(word_ref, pos_ref, type_ref, g_ref, b_ref, o_ref):
    # word: (1, S, H) gathered word embeddings for this batch element; pos: (1, S, H);
    # type: (1, 1, H) (token_type_ids are all zero); gamma/beta: (1, 1, H).
    x = word_ref[...].astype(jnp.float32) + pos_ref[...] + type_ref[...]
    o_ref[...] = _layernorm(x, g_ref[...], b_ref[...]).astype(o_ref.dtype)


def bert_encoder_kernel(x_ref, maskb_ref,
                        wqkv_ref, bqkv_ref, wo_ref, bo_ref,
                        ln1g_ref, ln1b_ref,
                        w1_ref, b1_ref, w2_ref, b2_ref,
                        ln2g_ref, ln2b_ref,
                        o_ref, *, num_heads):
    # grid = (batch, layer). The output block keeps the same block index for every layer
    # step, so the residual stream for this batch row stays resident in VMEM across all L
    # layers, while the per-layer weight slabs stream in (double-buffered on the L axis).
    layer = pl.program_id(1)

    @pl.when(layer == 0)
    def _():
        o_ref[...] = x_ref[...].astype(o_ref.dtype)   # seed the residual from the embeddings

    x = o_ref[0].astype(jnp.float32)                  # (S, H) residual stream (f32, resident)
    x_bf = x.astype(jnp.bfloat16)
    S, H = x.shape
    hd = H // num_heads
    scale = 1.0 / math.sqrt(hd)

    # ---- self-attention: fused QKV projection (one lane-dense (S,H)@(H,3H) matmul) ----
    qkv = jnp.dot(x_bf, wqkv_ref[0], preferred_element_type=jnp.float32) + bqkv_ref[0]
    q_all = qkv[:, :H] * scale                        # fold 1/sqrt(hd) into Q once (S*H muls)
    k_all = qkv[:, H:2 * H]
    v_all = qkv[:, 2 * H:]
    mask_b = jnp.broadcast_to(maskb_ref[0], (S, S))   # hoisted: one (1,S)->(S,S) broadcast

    # TODO(synk): at production nh=12 consider lax.fori_loop(unroll=2-4) over heads with an
    # (S,H) context accumulator to bound vreg live ranges; nh is tiny in this demo.
    ctx_parts = []
    for h in range(num_heads):
        sl = slice(h * hd, (h + 1) * hd)
        qh = q_all[:, sl].astype(jnp.bfloat16)
        kh = k_all[:, sl].astype(jnp.bfloat16)
        vh = v_all[:, sl].astype(jnp.bfloat16)
        # QK^T without materializing K^T: contract the trailing axes directly on the MXU.
        s = lax.dot_general(qh, kh, (((1,), (1,)), ((), ())),
                            preferred_element_type=jnp.float32) + mask_b
        s = s - jnp.max(s, axis=-1, keepdims=True)    # f32 softmax
        p = jnp.exp(s)
        p = p * pl.reciprocal(jnp.sum(p, axis=-1, keepdims=True), approx=True)
        ctx_parts.append(jnp.dot(p.astype(jnp.bfloat16), vh,
                                 preferred_element_type=jnp.float32))   # (S, hd)
    ctx = jnp.concatenate(ctx_parts, axis=-1)         # (S, H) lane-dense head concat

    # Single full-width output projection (K = H instead of per-head K = hd).
    attn = jnp.dot(ctx.astype(jnp.bfloat16), wo_ref[0],
                   preferred_element_type=jnp.float32) + bo_ref[0]
    h1 = _layernorm(x + attn, ln1g_ref[0], ln1b_ref[0])

    # ---- feed-forward ----
    ff = _gelu_tanh(jnp.dot(h1.astype(jnp.bfloat16), w1_ref[0],
                            preferred_element_type=jnp.float32) + b1_ref[0])
    ff_out = jnp.dot(ff.astype(jnp.bfloat16), w2_ref[0],
                     preferred_element_type=jnp.float32) + b2_ref[0]
    out = _layernorm(h1 + ff_out, ln2g_ref[0], ln2b_ref[0])

    o_ref[0] = out.astype(o_ref.dtype)


def demo_fusion_kernel(cls_ref, age_ref, gen_ref, eth_ref, ins_ref, o_ref):
    # demo_embedding = cls + (age + gender + ethnicity + insurance) / 4   -- tiny (B,H) block.
    extra = (age_ref[...] + gen_ref[...] + eth_ref[...] + ins_ref[...]) * 0.25
    o_ref[...] = cls_ref[...] + extra


# ----------------------------- wrappers ---------------------------------------

def _chip_vmem_bytes():
    # Trace-time capability query; fall back to the smallest production capacity
    # (v7x: 64 MiB per TensorCore) if the query is unavailable on this jax build.
    try:
        return int(pltpu.get_tpu_info().vmem_capacity_bytes)
    except Exception:
        return 64 << 20


def _lspec(shape):
    """BlockSpec selecting one layer-slab per L grid step (streamed / double-buffered)."""
    nz = len(shape) - 1
    return pl.BlockSpec((1,) + tuple(shape[1:]),
                        lambda b, l, _nz=nz: (l,) + (0,) * _nz)


def embed_layernorm(word, pos, type_row, gamma, beta):
    B, S, H = word.shape
    return pl.pallas_call(
        embed_layernorm_kernel,
        grid=(B,),
        in_specs=[
            pl.BlockSpec((1, S, H), lambda b: (b, 0, 0)),   # word embeds (per batch row)
            pl.BlockSpec((1, S, H), lambda b: (0, 0, 0)),   # position embeds (shared)
            pl.BlockSpec((1, 1, H), lambda b: (0, 0, 0)),   # type-0 embedding row
            pl.BlockSpec((1, 1, H), lambda b: (0, 0, 0)),   # LN gamma
            pl.BlockSpec((1, 1, H), lambda b: (0, 0, 0)),   # LN beta
        ],
        out_specs=pl.BlockSpec((1, S, H), lambda b: (b, 0, 0)),
        out_shape=jax.ShapeDtypeStruct((B, S, H), jnp.float32),
        compiler_params=pltpu.CompilerParams(dimension_semantics=("parallel",)),
    )(word, pos, type_row, gamma, beta)


def bert_encoder(x, mask_bias, enc, num_heads):
    B, S, H = x.shape
    L = enc['wqkv'].shape[0]
    # <= 75% of physical VMEM on this chip (v7x 64 MiB -> ~48 MiB; v5e/v6e 128 MiB -> 96 MiB).
    vmem_limit = int(min(_chip_vmem_bytes() * 3 // 4, 96 << 20))

    in_specs = [
        pl.BlockSpec((1, S, H), lambda b, l: (b, 0, 0)),     # embeddings (read at layer 0)
        pl.BlockSpec((1, 1, S), lambda b, l: (b, 0, 0)),     # additive attention-mask bias
        _lspec(enc['wqkv'].shape), _lspec(enc['bqkv'].shape),
        _lspec(enc['wo'].shape), _lspec(enc['bo'].shape),
        _lspec(enc['ln1_g'].shape), _lspec(enc['ln1_b'].shape),
        _lspec(enc['w1'].shape), _lspec(enc['b1'].shape),
        _lspec(enc['w2'].shape), _lspec(enc['b2'].shape),
        _lspec(enc['ln2_g'].shape), _lspec(enc['ln2_b'].shape),
    ]
    return pl.pallas_call(
        functools.partial(bert_encoder_kernel, num_heads=num_heads),
        grid=(B, L),
        in_specs=in_specs,
        out_specs=pl.BlockSpec((1, S, H), lambda b, l: (b, 0, 0)),
        out_shape=jax.ShapeDtypeStruct((B, S, H), jnp.float32),
        compiler_params=pltpu.CompilerParams(
            dimension_semantics=("parallel", "arbitrary"),
            vmem_limit_bytes=vmem_limit),
    )(x, mask_bias,
      enc['wqkv'], enc['bqkv'], enc['wo'], enc['bo'],
      enc['ln1_g'], enc['ln1_b'], enc['w1'], enc['b1'],
      enc['w2'], enc['b2'], enc['ln2_g'], enc['ln2_b'])


def demo_fusion(cls_tok, age_e, gen_e, eth_e, ins_e):
    # (B, H) is tiny; one lane-dense block suffices.
    return pl.pallas_call(
        demo_fusion_kernel,
        out_shape=jax.ShapeDtypeStruct(cls_tok.shape, jnp.float32),
    )(cls_tok, age_e, gen_e, eth_e, ins_e)


# ----------------------------- full forward ------------------------------------

def behrt_demo_forward(params, cfg, input_ids, attention_mask,
                       age_ids, gender_ids, ethnicity_ids, insurance_ids):
    # torch.clamp on demographic ids
    age_ids = jnp.clip(age_ids, 0, params['age_emb'].shape[0] - 1)
    gender_ids = jnp.clip(gender_ids, 0, params['gender_emb'].shape[0] - 1)
    ethnicity_ids = jnp.clip(ethnicity_ids, 0, params['eth_emb'].shape[0] - 1)
    insurance_ids = jnp.clip(insurance_ids, 0, params['ins_emb'].shape[0] - 1)

    B, S = input_ids.shape

    # --- BERT embeddings: gathers in plain-JAX glue, sum + LayerNorm fused in Pallas ---
    word = params['word_emb'][input_ids]                        # (B, S, H)
    pos = params['pos_emb'][:S][None, :, :]                     # (1, S, H)
    type_row = params['type_emb'][0][None, None, :]             # (1, 1, H); token_type_ids == 0
    x = embed_layernorm(word, pos, type_row, params['emb_ln_g'], params['emb_ln_b'])

    # Extended attention mask: additive, large-but-finite per-key bias.
    mask_bias = ((1.0 - attention_mask.astype(jnp.float32)) * _MASK_BIAS).reshape(B, 1, S)

    # --- BERT encoder: single grid=(B, L) kernel streaming the stacked layer weights ---
    x = bert_encoder(x, mask_bias, params['enc'], cfg['n_heads'])

    cls_tok = x[:, 0, :]                                        # (B, H)

    # --- demographic embedding lookups (glue) + fused combine (Pallas) ---
    age_e = params['age_emb'][age_ids]
    gen_e = params['gender_emb'][gender_ids]
    eth_e = params['eth_emb'][ethnicity_ids]
    ins_e = params['ins_emb'][insurance_ids]
    return demo_fusion(cls_tok, age_e, gen_e, eth_e, ins_e)


# ----------------------------- deterministic init -------------------------------

def init_params(key, cfg):
    H, I, L = cfg['hidden'], cfg['intermediate'], cfg['n_layers']
    keys = iter(jax.random.split(key, 7 + 6 * L))
    nxt = lambda: next(keys)
    nrm = lambda k, shape: (0.02 * jax.random.normal(k, shape)).astype(jnp.float32)

    params = {
        'word_emb': nrm(nxt(), (cfg['vocab'], H)),
        'pos_emb': nrm(nxt(), (cfg['max_pos'], H)),
        'type_emb': nrm(nxt(), (cfg['type_vocab'], H)),
        'emb_ln_g': jnp.ones((1, 1, H), jnp.float32),
        'emb_ln_b': jnp.zeros((1, 1, H), jnp.float32),
        'age_emb': nrm(nxt(), (cfg['num_ages'], H)),
        'gender_emb': nrm(nxt(), (cfg['num_genders'], H)),
        'eth_emb': nrm(nxt(), (cfg['num_eth'], H)),
        'ins_emb': nrm(nxt(), (cfg['num_ins'], H)),
    }

    layers = []
    for _ in range(L):
        wq = nrm(nxt(), (H, H))
        wk = nrm(nxt(), (H, H))
        wv = nrm(nxt(), (H, H))
        wo = nrm(nxt(), (H, H))
        layers.append({
            # Fused QKV weight (H, 3H): one lane-dense projection matmul per layer.
            'wqkv': jnp.concatenate([wq, wk, wv], axis=1).astype(jnp.bfloat16),
            'bqkv': jnp.zeros((1, 3 * H), jnp.float32),
            'wo': wo.astype(jnp.bfloat16),
            'bo': jnp.zeros((1, H), jnp.float32),
            'ln1_g': jnp.ones((1, H), jnp.float32), 'ln1_b': jnp.zeros((1, H), jnp.float32),
            'w1': nrm(nxt(), (H, I)).astype(jnp.bfloat16), 'b1': jnp.zeros((1, I), jnp.float32),
            'w2': nrm(nxt(), (I, H)).astype(jnp.bfloat16), 'b2': jnp.zeros((1, H), jnp.float32),
            'ln2_g': jnp.ones((1, H), jnp.float32), 'ln2_b': jnp.zeros((1, H), jnp.float32),
        })
    # Stack all layer weights on a leading L axis so one pallas_call can stream them.
    params['enc'] = {k: jnp.stack([lp[k] for lp in layers]) for k in layers[0]}
    return params


# ----------------------------- demo run ------------------------------------------

if __name__ == "__main__":
    # Scaled-down BertConfig-like hyperparameters (module hardcodes 768/12/12/3072;
    # structure is preserved, sizes shrunk for the demo).
    num_ages, num_genders, num_eth, num_ins = 10, 2, 3, 3
    cfg = dict(
        hidden=32, n_layers=2, n_heads=2, intermediate=64,
        max_pos=16, type_vocab=2,
        num_ages=num_ages, num_genders=num_genders, num_eth=num_eth, num_ins=num_ins,
        vocab=num_ages + num_genders + num_eth + num_ins + 2,
    )
    B, S = 2, 8   # B even: the 'parallel' batch axis splits cleanly over v7x's 2 TensorCores

    root = jax.random.PRNGKey(0)
    kp, k1, k2, k3, k4, k5 = jax.random.split(root, 6)
    params = init_params(kp, cfg)

    input_ids = jax.random.randint(k1, (B, S), 0, cfg['vocab'], dtype=jnp.int32)
    attention_mask = jnp.ones((B, S), jnp.int32)
    age_ids = jax.random.randint(k2, (B,), 0, num_ages + 3, dtype=jnp.int32)   # exercises clamp
    gender_ids = jax.random.randint(k3, (B,), 0, num_genders, dtype=jnp.int32)
    ethnicity_ids = jax.random.randint(k4, (B,), 0, num_eth, dtype=jnp.int32)
    insurance_ids = jax.random.randint(k5, (B,), 0, num_ins, dtype=jnp.int32)

    out = behrt_demo_forward(params, cfg, input_ids, attention_mask,
                             age_ids, gender_ids, ethnicity_ids, insurance_ids)
    out = jax.block_until_ready(out)
    assert out.shape == (B, cfg['hidden']) and out.dtype == jnp.float32
    assert bool(jnp.all(jnp.isfinite(out)))
    print("KERNEL_OK")
</pallas_src>

<mosaic_0001>
module attributes {stable_mosaic.version = 11 : i64} {
  func.func @embed_layernorm_kernel(%arg0: i32, %arg1: memref<1x8x32xf32, #tpu.memory_space<vmem>>, %arg2: memref<1x8x32xf32, #tpu.memory_space<vmem>>, %arg3: memref<1x1x32xf32, #tpu.memory_space<vmem>>, %arg4: memref<1x1x32xf32, #tpu.memory_space<vmem>>, %arg5: memref<1x1x32xf32, #tpu.memory_space<vmem>>, %arg6: memref<1x8x32xf32, #tpu.memory_space<vmem>>) attributes {dimension_semantics = [#tpu.dimension_semantics<parallel>], iteration_bounds = array<i64: 2>, scalar_prefetch = 0 : i64, scratch_operands = 0 : i64, tpu.core_type = #tpu.core_type<tc>, window_params = [{transform_indices = @transform_0, window_bounds = array<i64: 1, 8, 32>}, {pipeline_mode = #tpu.pipeline_mode<synchronous>, transform_indices = @transform_1, window_bounds = array<i64: 1, 8, 32>}, {pipeline_mode = #tpu.pipeline_mode<synchronous>, transform_indices = @transform_2, window_bounds = array<i64: 1, 1, 32>}, {pipeline_mode = #tpu.pipeline_mode<synchronous>, transform_indices = @transform_3, window_bounds = array<i64: 1, 1, 32>}, {pipeline_mode = #tpu.pipeline_mode<synchronous>, transform_indices = @transform_4, window_bounds = array<i64: 1, 1, 32>}, {transform_indices = @transform_5, window_bounds = array<i64: 1, 8, 32>}]} {
    %c0 = arith.constant 0 : index
    %c0_0 = arith.constant 0 : index
    %c0_1 = arith.constant 0 : index
    %0 = vector.load %arg1[%c0, %c0_0, %c0_1] : memref<1x8x32xf32, #tpu.memory_space<vmem>>, vector<1x8x32xf32>
    %c0_2 = arith.constant 0 : index
    %c0_3 = arith.constant 0 : index
    %c0_4 = arith.constant 0 : index
    %1 = vector.load %arg2[%c0_2, %c0_3, %c0_4] : memref<1x8x32xf32, #tpu.memory_space<vmem>>, vector<1x8x32xf32>
    %2 = arith.addf %0, %1 : vector<1x8x32xf32>
    %c0_5 = arith.constant 0 : index
    %c0_6 = arith.constant 0 : index
    %c0_7 = arith.constant 0 : index
    %3 = vector.load %arg3[%c0_5, %c0_6, %c0_7] : memref<1x1x32xf32, #tpu.memory_space<vmem>>, vector<1x1x32xf32>
    %4 = vector.broadcast %3 : vector<1x1x32xf32> to vector<1x8x32xf32>
    %5 = arith.addf %2, %4 : vector<1x8x32xf32>
    %c0_8 = arith.constant 0 : index
    %c0_9 = arith.constant 0 : index
    %c0_10 = arith.constant 0 : index
    %6 = vector.load %arg4[%c0_8, %c0_9, %c0_10] : memref<1x1x32xf32, #tpu.memory_space<vmem>>, vector<1x1x32xf32>
    %c0_11 = arith.constant 0 : index
    %c0_12 = arith.constant 0 : index
    %c0_13 = arith.constant 0 : index
    %7 = vector.load %arg5[%c0_11, %c0_12, %c0_13] : memref<1x1x32xf32, #tpu.memory_space<vmem>>, vector<1x1x32xf32>
    %cst = arith.constant dense<0.000000e+00> : vector<1x8xf32>
    %8 = vector.multi_reduction <add>, %5, %cst [2] : vector<1x8x32xf32> to vector<1x8xf32>
    %9 = vector.shape_cast %8 : vector<1x8xf32> to vector<1x8x1xf32>
    %cst_14 = arith.constant 3.200000e+01 : f32
    %10 = vector.broadcast %cst_14 : f32 to vector<1x8x1xf32>
    %11 = arith.divf %9, %10 : vector<1x8x1xf32>
    %12 = vector.broadcast %11 : vector<1x8x1xf32> to vector<1x8x32xf32>
    %13 = arith.subf %5, %12 : vector<1x8x32xf32>
    %14 = arith.mulf %13, %13 : vector<1x8x32xf32>
    %cst_15 = arith.constant dense<0.000000e+00> : vector<1x8xf32>
    %15 = vector.multi_reduction <add>, %14, %cst_15 [2] : vector<1x8x32xf32> to vector<1x8xf32>
    %16 = vector.shape_cast %15 : vector<1x8xf32> to vector<1x8x1xf32>
    %cst_16 = arith.constant 3.200000e+01 : f32
    %17 = vector.broadcast %cst_16 : f32 to vector<1x8x1xf32>
    %18 = arith.divf %16, %17 : vector<1x8x1xf32>
    %19 = vector.broadcast %11 : vector<1x8x1xf32> to vector<1x8x32xf32>
    %20 = arith.subf %5, %19 : vector<1x8x32xf32>
    %cst_17 = arith.constant 9.99999996E-13 : f32
    %21 = vector.broadcast %cst_17 : f32 to vector<1x8x1xf32>
    %22 = arith.addf %18, %21 : vector<1x8x1xf32>
    %23 = math.rsqrt %22 : vector<1x8x1xf32>
    %24 = vector.broadcast %23 : vector<1x8x1xf32> to vector<1x8x32xf32>
    %25 = arith.mulf %20, %24 : vector<1x8x32xf32>
    %26 = vector.broadcast %6 : vector<1x1x32xf32> to vector<1x8x32xf32>
    %27 = arith.mulf %25, %26 : vector<1x8x32xf32>
    %28 = vector.broadcast %7 : vector<1x1x32xf32> to vector<1x8x32xf32>
    %29 = arith.addf %27, %28 : vector<1x8x32xf32>
    %c0_18 = arith.constant 0 : index
    %c0_19 = arith.constant 0 : index
    %c0_20 = arith.constant 0 : index
    %30 = vector.load %arg6[%c0_18, %c0_19, %c0_20] : memref<1x8x32xf32, #tpu.memory_space<vmem>>, vector<1x8x32xf32>
    tpu.vector_store %arg6[%c0_18, %c0_19, %c0_20], %29 {strides = array<i32>} : memref<1x8x32xf32, #tpu.memory_space<vmem>>, vector<1x8x32xf32>,
    return
  }
  func.func @transform_0(%arg0: i32) -> (i32, i32, i32) {
    %c0_i32 = arith.constant 0 : i32
    %c0_i32_0 = arith.constant 0 : i32
    %c0_i32_1 = arith.constant 0 : i32
    return %arg0, %c0_i32, %c0_i32_0 : i32, i32, i32
  }
  func.func @transform_1(%arg0: i32) -> (i32, i32, i32) {
    %c0_i32 = arith.constant 0 : i32
    %c0_i32_0 = arith.constant 0 : i32
    %c0_i32_1 = arith.constant 0 : i32
    %c0_i32_2 = arith.constant 0 : i32
    return %c0_i32, %c0_i32_0, %c0_i32_1 : i32, i32, i32
  }
  func.func @transform_2(%arg0: i32) -> (i32, i32, i32) {
    %c0_i32 = arith.constant 0 : i32
    %c0_i32_0 = arith.constant 0 : i32
    %c0_i32_1 = arith.constant 0 : i32
    %c0_i32_2 = arith.constant 0 : i32
    return %c0_i32, %c0_i32_0, %c0_i32_1 : i32, i32, i32
  }
  func.func @transform_3(%arg0: i32) -> (i32, i32, i32) {
    %c0_i32 = arith.constant 0 : i32
    %c0_i32_0 = arith.constant 0 : i32
    %c0_i32_1 = arith.constant 0 : i32
    %c0_i32_2 = arith.constant 0 : i32
    return %c0_i32, %c0_i32_0, %c0_i32_1 : i32, i32, i32
  }
  func.func @transform_4(%arg0: i32) -> (i32, i32, i32) {
    %c0_i32 = arith.constant 0 : i32
    %c0_i32_0 = arith.constant 0 : i32
    %c0_i32_1 = arith.constant 0 : i32
    %c0_i32_2 = arith.constant 0 : i32
    return %c0_i32, %c0_i32_0, %c0_i32_1 : i32, i32, i32
  }
  func.func @transform_5(%arg0: i32) -> (i32, i32, i32) {
    %c0_i32 = arith.constant 0 : i32
    %c0_i32_0 = arith.constant 0 : i32
    %c0_i32_1 = arith.constant 0 : i32
    return %arg0, %c0_i32, %c0_i32_0 : i32, i32, i32
  }
}

</mosaic_0001>

<bundles_post_ra>
// kernel: tpu_custom_call.1
= control target key start
LH: loop header
LB: loop body
LE: loop exit
PB: predicated region body
PF: predicated region fallthrough
CT: control target
= control target key end

     0   :  { %10 = vsyncpa [#allocation3], 0  ;;  %s846_s0 = inlined_call_operand.hbm [shape: f32[2,8,32], index: 0, kind: input, shape index: {}]   ;;  %s847_s1 = inlined_call_operand.hbm [shape: f32[1,8,32], index: 1, kind: input, shape index: {}]   ;;  %s848_s2 = inlined_call_operand.vmem [shape: f32[1,1,32], index: 2, kind: input, shape index: {}]   ;;  %s849_s3 = inlined_call_operand.vmem [shape: f32[1,1,32], index: 3, kind: input, shape index: {}]   ;;  %s850_s4 = inlined_call_operand.vmem [shape: f32[1,1,32], index: 4, kind: input, shape index: {}]   ;;  %s851_s5 = inlined_call_operand.hbm [shape: f32[2,8,32], index: 5, kind: output, shape index: {}]  }
   0x1   :  { %12 = vsyncpa [#allocation3 + $0x1], 0 }
   0x2   :  { %13 = vsyncpa [#allocation6], 0 }
   0x3   :  { %14 = vsyncpa [#allocation4], 0 }
   0x4   :  { %16 = vsyncpa [#allocation4 + $0x1], 0  ;;  %s629_s18 = smov 0   ;;  %s631_s19 = smov 0  }
   0x5   :  { %s633_s20 = smov 0   ;;  %s635_s21 = smov 0  }
   0x6 LB: > { %s650_s22 = sadd.s32 4294967295, %s594_s21   ;;  %s390_s23 = sadd.s32 4294967294, %s594_s21   ;;  %s594_s21 = sphi %s635_s21, %s875_s21   ;;  %s590_s20 = sphi %s633_s20, %s874_s20   ;;  %s586_s19 = sphi %s631_s19, %s873_s19   ;;  %s582_s18 = sphi %s629_s18, %s872_s18  }
   0x7   : > { %p42_p0 = scmp.ne.s32.totalorder %s586_s19, %s582_s18  ;;  %p852_p1 = scmp.eq.s32.totalorder %s650_s22, 0 }
   0x8   : > { %p156_p3 = scmp.eq.s32.totalorder %s390_s23, 1  ;;  %p391_p5 = scmp.ge.s32.totalorder %s594_s21, 1 }
   0x9   : > { %p659_p4 = por %p852_p1, %p42_p0  ;;  %p163_p7 = scmp.lt.s32.totalorder %s594_s21, 3 }
   0xa   : > { %p664_p6 = por %p156_p3, %p42_p0  ;;  %s596_s27 = smov [#allocation5]  }
   0xb   : > { %s855_s24 = scalar_select %p659_p4, 1, 0 }
   0xc   : > { %s856_s25 = scalar_select %p664_p6, 1, 0 }
   0xd   : > { %p669_p8 = pnand %p391_p5, %p163_p7  ;;  %s176_s28 = sshll.u32 %s596_s27, 4  ;;  %s177_s28 = int_to_ptr.vmem [resolvable:$true] %s176_s28 }
   0xe   : > { %s677_s29 = sadd.s32 1, %s594_s21   ;;  %s29_s8 = sadd.s32 1, %s590_s20 }
   0xf   : > { %s857_s26 = scalar_select %p669_p8, 1, 0 }
  0x10   : > { %p415_p10 = pneg %p669_p8  ;;  %s26_s6 = ssub.s32 %s594_s21, %s677_s29 }
  0x11   : > { %p687_p12 = scmp.eq.s32.totalorder %s26_s6, 0  ;;  %s466_s11 = scalar_lea.hbm %s847_s1, 128 }
  0x12   : > { %p681_p11 = pnand %p415_p10, %p852_p1  ;;  %p467_p0 = scmp.ne.s32.totalorder %s847_s1, %s466_s11 }
  0x13   : > { %s859_s7 = scalar_select %p687_p12, 1, 0 }
  0x14   : > { %p468_p3 = pneg %p681_p11  ;;  %p473_p10 = scmp.lt.u32.totalorder %s466_s11, %s847_s1 }
  0x16   : > { %p469_p5 = pnand %p468_p3, %p467_p0 }
  0x18   : > { %p470_p7 = pneg %p469_p5 }
  0x1a   : > { %p475_p9 = pnand %p473_p10, %p470_p7 }
  0x1c   : > { %478 = shalt.err (!%p475_p9)
}
  0x1d   : > { %s479_s16 = scalar_lea.vmem %s177_s28, 128  ;;  %p487_p6 = scmp.lt.s32.totalorder %s177_s28, %s177_s28 }
  0x1e   : > { %p480_p1 = scmp.ne.s32.totalorder %s177_s28, %s479_s16  ;;  %p488_p4 = scmp.lt.s32.totalorder %s479_s16, %s479_s16 }
  0x20   : > { %p482_p2 = pnand %p480_p1, %p468_p3  ;;  %p489_p8 = por %p488_p4, %p487_p6 }
  0x22   : > { %p483_p13 = pneg %p482_p2 }
  0x24   : > { %p490_p12 = pnand %p489_p8, %p483_p13 }
  0x26   : > { %493 = shalt.err (!%p490_p12)
}
  0x27   : > { %418 = dma.hbm_to_vmem [thread:$0]  (!%p681_p11), %s847_s1, 128, %s177_s28, [#allocation6]  }
  0x28   : > { %p860_p1 = scmp.ne.s32.totalorder %s859_s7, 0  ;;  %p37_p2 = scmp.eq.s32.totalorder %s594_s21, 0 }
  0x29   : > { %p861_p4 = scmp.ne.s32.totalorder %s590_s20, %s586_s19  ;;  %p862_p6 = scmp.eq.s32.totalorder %s650_s22, 1 }
  0x2a   : > { %s713_s27 = scalar_select %p860_p1, %s590_s20, %s29_s8  }
  0x2b   : > { %p721_p8 = por %p862_p6, %p861_p4  ;;  %p428_p9 = scmp.lt.s32.totalorder %s594_s21, 2 }
  0x2c   : > { %s196_s6 = sand.u32 1, %s590_s20   ;;  %p864_p12 = pmov %p861_p4 }
  0x2d   : > { %s394_s9 = sshll.u32 %s196_s6, 3  ;;  %s395_s10 = sshll.u32 %s594_s21, 7 }
  0x2e   : > { %p38_p13 = por %p37_p2, %p864_p12  ;;  %s734_s28 = scalar_lea.hbm %s846_s0, %s395_s10 }
  0x2f   : > { %s200_s7 = scalar_lea.vmem [#allocation2], %s394_s9  ;;  %s197_s14 = scalar_lea.sflag [#allocation3], %s196_s6 }
  0x30   : > { %s207_s8 = sshll.u32 %s200_s7, 4  ;;  %p736_p11 = pnand %p428_p9, %p38_p13  ;;  %s740_s8 = int_to_ptr.vmem [resolvable:$true] %s207_s8 }
  0x31   : > { %s494_s15 = scalar_lea.hbm %s734_s28, 128  ;;  %s499_s23 = scalar_lea.hbm %s846_s0, 256 }
  0x32   : > { %p495_p0 = scmp.ne.s32.totalorder %s734_s28, %s494_s15  ;;  %p496_p3 = pneg %p736_p11 }
  0x33   : > { %p500_p10 = scmp.lt.u32.totalorder %s734_s28, %s846_s0  ;;  %p501_p1 = scmp.lt.u32.totalorder %s499_s23, %s494_s15 }
  0x34   : > { %p497_p5 = pnand %p496_p3, %p495_p0  ;;  %p503_p4 = scmp.lt.u32.totalorder %s494_s15, %s734_s28 }
  0x35   : > { %p502_p2 = por %p501_p1, %p500_p10 }
  0x36   : > { %p498_p7 = pneg %p497_p5 }
  0x37   : > { %p504_p6 = por %p503_p4, %p502_p2 }
  0x39   : > { %p505_p9 = pnand %p504_p6, %p498_p7 }
  0x3b   : > { %508 = shalt.err (!%p505_p9)
}
  0x3c   : > { %s509_s6 = scalar_lea.vmem %s740_s8, 128  ;;  %s597_s11 = smov [#allocation2]  }
  0x3d   : > { %p510_p12 = scmp.ne.s32.totalorder %s740_s8, %s509_s6  ;;  %s514_s12 = sshll.u32 %s597_s11, 4  ;;  %s515_s12 = int_to_ptr.vmem [resolvable:$false] %s514_s12 }
  0x3e   : > { %s516_s7 = scalar_lea.vmem %s515_s12, 256  ;;  %p517_p5 = scmp.lt.s32.totalorder %s740_s8, %s515_s12 }
  0x3f   : > { %p512_p13 = pnand %p510_p12, %p496_p3  ;;  %p518_p10 = scmp.lt.s32.totalorder %s516_s7, %s509_s6 }
  0x41   : > { %p513_p0 = pneg %p512_p13  ;;  %p519_p1 = por %p518_p10, %p517_p5 }
  0x43   : > { %p520_p2 = pnand %p519_p1, %p513_p0 }
  0x45   : > { %523 = shalt.err (!%p520_p2)
}
  0x46   : > { %422 = dma.hbm_to_vmem [thread:$0]  (!%p736_p11), %s734_s28, 128, %s740_s8, %s197_s14  }
  0x47   : > { %p866_p7 = scmp.ne.s32.totalorder %s857_s26, 0 }
  0x48   : > { %s770_s15 = sand.u32 (!%p866_p7), 1, %s586_s19   ;;  %p867_p3 = scmp.ne.s32.totalorder (!%p866_p7), %s855_s24, 0 }
  0x49   : > { %216 = sbr.rel (%p866_p7) target bundleno = 416 (0x1a0), region = 40  ;;  %s397_s16 = sshll.u32 (!%p866_p7), %s770_s15, 3 }
  0x4a   : > { %s219_s17 = scalar_lea.sflag (!%p866_p7), [#allocation3], %s770_s15  ;;  %s222_s23 = scalar_lea.vmem (!%p866_p7), [#allocation2], %s397_s16 }
  0x50   : > { %569 = dma.done.wait (%p867_p3), %s219_s17, 128  }
  0x51   : > { %571 = vsyncadd (%p867_p3), %s219_s17, 4294967168  ;;  %p868_p11 = scmp.eq.s32.totalorder %s650_s22, 0 }
  0x53   : > { %573 = dma.done.wait (%p868_p11), [#allocation6], 128   ;;  %p869_p4 = pmov %p868_p11 }
  0x54   : > { %v253_v0 = vld [vmem:[%s222_s23] sm:$0xff]  ;;  %v254_v1 = vld [vmem:[#allocation5] sm:$0xff]  ;;  %vm266_vm0 = vcmask 261120   ;;  %s404_s9 = sshll.u32 %s650_s22, 7  ;;  %s252_s10 = scalar_lea.vmem [#allocation7], %s397_s16 }
  0x55   : > { %575 = vsyncadd (%p869_p4), [#allocation6], 4294967168  ;;  %v400_v2 = vld [vmem:[%s848_s2] ss:$0 sm:$0xff]  ;;  %v255_v3 = vadd.f32 %v254_v1, %v253_v0  ;;  %s310_s6 = sshll.u32 %s252_s10, 4  ;;  %s801_s7 = scalar_lea.hbm %s851_s5, %s404_s9  ;;  %s803_s6 = int_to_ptr.vmem [resolvable:$true] %s310_s6 }
  0x56   : > { %v401_v15 = vld [vmem:[%s849_s3] ss:$0 sm:$0xff]  ;;  %s297_s17 = scalar_lea.sflag [#allocation4], %s770_s15  ;;  %s524_s23 = scalar_lea.vmem %s803_s6, 128 }
  0x57   : > { %v263_v4 = vadd.f32 %v400_v2, %v255_v3  ;;  %v402_v17 = vld [vmem:[%s850_s4] ss:$0 sm:$0xff]  ;;  %p525_p6 = scmp.ne.s32.totalorder %s803_s6, %s524_s23  ;;  %s598_s22 = smov [#allocation7]  }
  0x58   : > { %s528_s16 = sshll.u32 %s598_s22, 4  ;;  %s529_s16 = int_to_ptr.vmem [resolvable:$false] %s528_s16 }
  0x59   : > { %v267_v5 = vsel %vm266_vm0, %v263_v4, 0.0  ;;  %p526_p9 = pnand %p525_p6, %p721_p8  ;;  %s530_s26 = scalar_lea.vmem %s529_s16, 256 }
  0x5a   : > { %268 = vadd.xlane.f32.xlu0 %v267_v5  ;;  %p531_p13 = scmp.lt.s32.totalorder %s803_s6, %s529_s16  ;;  %p532_p0 = scmp.lt.s32.totalorder %s530_s26, %s524_s23 }
  0x5b   : > { %p527_p12 = pneg %p526_p9 }
  0x5c   : > { %p533_p5 = por %p532_p0, %p531_p13 }
  0x5e   : > { %p534_p10 = pnand %p533_p5, %p527_p12 }
  0xe7   : > { %v269_v6 = vpop.xlane.xlu0 %268 }
  0xe8   : > { %v271_v7 = vmul.f32 0.03125, %v269_v6 }
  0xea   : > { %v272_v8 = vsub.f32 %v263_v4, %v271_v7 }
  0xec   : > { %v273_v9 = vmul.f32 %v272_v8, %v272_v8 }
  0xee   : > { %v274_v10 = vsel %vm266_vm0, %v273_v9, 0.0 }
  0xef   : > { %275 = vadd.xlane.f32.xlu0 %v274_v10 }
 0x17c   : > { %v276_v11 = vpop.xlane.xlu0 %275 }
 0x17d   : > { %v277_v12 = vmul.f32 0.03125, %v276_v11 }
 0x17f   : > { %v278_v13 = vadd.f32 1e-12, %v277_v12 }
 0x181   : > { %464 = vrsqrt.f32 %v278_v13 }
 0x18b   : > { %v465_v14 = vpop.eup %464 }
 0x18c   : > { %v280_v16 = vmul.f32 %v465_v14, %v272_v8 }
 0x18e   : > { %v287_v18 = vmul.f32 %v401_v15, %v280_v16 }
 0x190   : > { %v294_v19 = vadd.f32 %v402_v17, %v287_v18 }
 0x192   : > { %295 = vst.msk [vmem:[%s252_s10] sm:$0xff] %vm266_vm0, %v294_v19 }
 0x193   : > { %537 = shalt.err (!%p534_p10)
}
 0x194   : > { %s538_s15 = scalar_lea.hbm %s801_s7, 128  ;;  %s542_s8 = scalar_lea.hbm %s851_s5, 256 }
 0x195   : > { %p539_p1 = scmp.ne.s32.totalorder %s801_s7, %s538_s15  ;;  %p543_p3 = scmp.lt.u32.totalorder %s801_s7, %s851_s5 }
 0x196   : > { %p544_p11 = scmp.lt.u32.totalorder %s542_s8, %s538_s15  ;;  %p546_p6 = scmp.lt.u32.totalorder %s538_s15, %s801_s7 }
 0x197   : > { %p540_p2 = pnand %p539_p1, %p721_p8 }
 0x198   : > { %p545_p4 = por %p544_p11, %p543_p3 }
 0x199   : > { %p541_p7 = pneg %p540_p2 }
 0x19a   : > { %p547_p9 = por %p546_p6, %p545_p4 }
 0x19c   : > { %p548_p12 = pnand %p547_p9, %p541_p7 }
 0x19e   : > { %551 = shalt.err (!%p548_p12)
}
 0x19f   : > { %413 = dma.vmem_to_hbm [thread:$0]  (%p721_p8), %s803_s6, 128, %s801_s7, %s297_s17  }
 0x1a0 PF: > { %s322_s9 = sand.u32 1, %s582_s18   ;;  %p870_p13 = scmp.ne.s32.totalorder %s856_s25, 0 }
 0x1a1   : > { %p871_p0 = scmp.ge.s32.totalorder %s594_s21, 2  ;;  %s323_s10 = scalar_lea.sflag [#allocation4], %s322_s9 }
 0x1a3   : > { %p424_p5 = pnand %p871_p0, %p870_p13 }
 0x1a5   : > { %577 = dma.done.wait (!%p424_p5), %s323_s10, 128  }
 0x1a6   : > { %579 = vsyncadd (!%p424_p5), %s323_s10, 4294967168  ;;  %p19_p10 = scmp.ge.s32.totalorder %s677_s29, 4   ;;  %s872_s18 = smov %s586_s19 }
 0x1a7   : > { %s873_s19 = smov %s590_s20  ;;  %s874_s20 = smov %s713_s27 }
 0x1a8   : > { %s875_s21 = smov %s677_s29  ;;  %21 = sbr.rel (!%p19_p10) target bundleno = 6 (0x6), region = 89 }
 0x1af   :  { %328 = vsyncpa [#allocation3], 1 }
 0x1b0   :  { %330 = vsyncpa [#allocation3 + $0x1], 1 }
 0x1b1   :  { %331 = vsyncpa [#allocation6], 1 }
 0x1b2   :  { %332 = vsyncpa [#allocation4], 1 }
 0x1b3   :  { %334 = vsyncpa [#allocation4 + $0x1], 1 }

</bundles_post_ra>
